<compile_context>
chip_gen: v5e
topology: v5e:2x2
jax: 0.10.0
libtpu: 0.0.40
codegen_flags: <defaults>
</compile_context>

<pallas_src>
import jax
import jax.numpy as jnp
from jax.experimental import pallas as pl
from jax.experimental.pallas import tpu as pltpu


# -----------------------------------------------------------------------------
# Deterministic parameter initialization (mirrors the PyTorch __init__ shapes).
# These parameters are UNUSED by Orthonet.forward (which is identity), but are
# built here to honor the module definition.
# -----------------------------------------------------------------------------
CON_LIST = [-3, -2, -1, -0.5, 0, 0.5, 1, 2, 3]


def _conv2d_params(key, out_c, in_c, k, bias=True):
    # PyTorch custom init: weight ~ N(0, 0.002 / (k*k*out_c)), bias = 0
    n = k * k * out_c
    w = (0.002 / n) * jax.random.normal(key, (out_c, in_c, k, k), jnp.float32)
    p = {"w": w}
    if bias:
        p["b"] = jnp.zeros((out_c,), jnp.float32)
    return p


def _deconv_params(key, in_c, out_c):
    # ConvTranspose2d(in, out, kernel_size=4, stride=2, padding=1)
    n = 4 * 4 * out_c
    w = (0.002 / n) * jax.random.normal(key, (in_c, out_c, 4, 4), jnp.float32)
    return {"w": w, "b": jnp.zeros((out_c,), jnp.float32)}


def _bn_params(c):
    return {
        "gamma": jnp.ones((c,), jnp.float32),
        "beta": jnp.zeros((c,), jnp.float32),
        "mean": jnp.zeros((c,), jnp.float32),
        "var": jnp.ones((c,), jnp.float32),
    }


def _encoder_params(key, in_c, k):
    ks = jax.random.split(key, 4)
    chans = [(in_c, 64), (64, 128), (128, 256), (256, 512)]
    layers = []
    for kk, (ci, co) in zip(ks, chans):
        layers.append({"conv": _conv2d_params(kk, co, ci, k), "bn": _bn_params(co)})
    return {"conv1": layers[0], "conv2": layers[1], "conv3": layers[2], "conv4": layers[3]}


def init_orthonet_params(key, input_channels, pruning_size, kernel_size, time_range):
    keys = jax.random.split(key, 32)
    it = iter(keys)

    # --- BasePruner ---
    base = {
        "spatial_filter": _conv2d_params(next(it), 1, 1, 3, bias=False),
        "temporal_filter": _conv2d_params(next(it), 1, time_range, 1, bias=False),
        "encoder1": _encoder_params(next(it), input_channels, kernel_size),
        "encoder2": _encoder_params(next(it), input_channels, kernel_size),
        "encoder3": _encoder_params(next(it), input_channels, kernel_size),
        "deconv3": _deconv_params(next(it), 512, 256),
        "deconv2": _deconv_params(next(it), 256, 128),
        "deconv1": _deconv_params(next(it), 128, 64),
        "deconv0": _deconv_params(next(it), 64, 32),
        "output_layer": _conv2d_params(next(it), pruning_size, 32 + input_channels, kernel_size),
    }

    # --- TransitionPruner ---
    transition = {
        "network": _encoder_params(next(it), pruning_size, kernel_size),
        "deconv3": _deconv_params(next(it), 512, 256),
        "deconv2": _deconv_params(next(it), 256, 128),
        "deconv1": _deconv_params(next(it), 128, 64),
        "deconv0": _deconv_params(next(it), 64, 32),
        "output_layer": _conv2d_params(next(it), pruning_size, 32 + pruning_size, 3),
    }

    # --- OrthoQuerier ---
    q_in = 4 + pruning_size
    query = {
        "encoder": _encoder_params(next(it), q_in, kernel_size),
        "deconv3": _deconv_params(next(it), 512, 256),
        "deconv2": _deconv_params(next(it), 256, 128),
        "deconv1": _deconv_params(next(it), 128, 64),
        "deconv0": _deconv_params(next(it), 64, 32),
        "output_layer": _conv2d_params(next(it), 2 * len(CON_LIST), 32 + q_in, kernel_size),
    }

    return {"base": base, "transition": transition, "query": query}


# -----------------------------------------------------------------------------
# Pallas kernel for Orthonet.forward: identity, done as a lane-dense block copy
# with the output aliased onto the (donated) input buffer.
# -----------------------------------------------------------------------------
# Per-tile f32 budget: 2 MiB => 2 arrays x 2 pipeline buffers = 8 MiB resident,
# comfortably under v5e (16 MiB default scoped), v6e (32 MiB) and v7x (64 MiB
# physical VMEM per TC).
_MAX_TILE_BYTES = 2 * 1024 * 1024


def _copy_kernel(x_ref, o_ref):
    o_ref[...] = x_ref[...]


def _choose_lane_width(total):
    """Largest lane width (multiple of 128) that divides the element count."""
    for lane in (1024, 512, 256, 128):
        if total % lane == 0:
            return lane
    return None


def _choose_row_tile(rows, bytes_per_row):
    """Row-tile: whole array if small, else a multiple of 8 near the 2 MiB cap
    that divides `rows` evenly (avoids partial blocks / masked stores)."""
    if rows * bytes_per_row <= _MAX_TILE_BYTES or rows < 16:
        return rows
    tr = min(rows, max(8, _MAX_TILE_BYTES // bytes_per_row))
    tr -= tr % 8
    tr = max(tr, 8)
    while tr > 8 and rows % tr != 0:
        tr -= 8
    return tr if rows % tr == 0 else rows


def _identity_copy(xf):
    """xf: 2-D lane-dense view. Returns a copy (output aliased onto xf's buffer)."""
    rows, lanes = xf.shape
    tr = _choose_row_tile(rows, lanes * xf.dtype.itemsize)
    grid = (rows // tr,)

    copy = pl.pallas_call(
        _copy_kernel,
        out_shape=jax.ShapeDtypeStruct(xf.shape, xf.dtype),
        grid=grid,
        in_specs=[pl.BlockSpec((tr, lanes), lambda i: (i, 0))],
        out_specs=pl.BlockSpec((tr, lanes), lambda i: (i, 0)),
        input_output_aliases={0: 0},
        compiler_params=pltpu.CompilerParams(
            dimension_semantics=("parallel",),  # shards multi-tile grids across v7x's 2 TCs
            vmem_limit_bytes=32 << 20,
        ),
    )
    # Donate the flattened view so the in->out alias is honored without any
    # defensive copy: the identity allocates zero extra HBM for its output.
    return jax.jit(copy, donate_argnums=0)(xf)


def orthonet_forward(params, x):
    """Orthonet.forward(x) == x.  Implemented as a lane-dense Pallas copy kernel.

    x: (B, C, H, W) float32, NCHW layout (same as PyTorch).
    """
    del params  # forward does not use any parameters (see PyTorch reference)
    total = x.size
    lane = _choose_lane_width(total)
    if lane is None:
        # Odd element count: single full block (tail stores are masked). Rare path.
        xf = x.reshape(1, total)
    else:
        # Row-major contiguous flatten: pure metadata reshape, no extra XLA copy.
        xf = x.reshape(total // lane, lane)

    out = _identity_copy(xf)

    # TODO(synk): Orthonet.forward never calls self.base / self.transition /
    # self.query in the reference PyTorch code; they are initialized above but
    # intentionally not executed here to match forward-pass semantics exactly.
    return out.reshape(x.shape)


# -----------------------------------------------------------------------------
# Driver
# -----------------------------------------------------------------------------
if __name__ == "__main__":
    key = jax.random.PRNGKey(0)
    k_param, k_data = jax.random.split(key)

    # Small, deterministic configuration consistent with the module signature.
    input_channels = 4
    pruning_size = 8
    kernel_size = 3
    dropout_rate = 0.0
    time_range = 2

    params = init_orthonet_params(k_param, input_channels, pruning_size,
                                  kernel_size, time_range)

    # Example input: batch=2, channels=4, spatial=16x16, NCHW.
    x = jax.random.normal(k_data, (2, 4, 16, 16), dtype=jnp.float32)

    y = orthonet_forward(params, x)
    y = jax.block_until_ready(y)

    # Sanity: forward is identity.
    assert y.shape == x.shape and y.dtype == x.dtype
    assert bool(jnp.allclose(y, x)), "Orthonet.forward must be identity"

    print("KERNEL_OK")
</pallas_src>

<mosaic_0001>
module attributes {stable_mosaic.version = 11 : i64} {
  func.func @_copy_kernel(%arg0: i32, %arg1: memref<2x1024xf32, #tpu.memory_space<vmem>>, %arg2: memref<2x1024xf32, #tpu.memory_space<vmem>>) attributes {dimension_semantics = [#tpu.dimension_semantics<parallel>], iteration_bounds = array<i64: 1>, scalar_prefetch = 0 : i64, scratch_operands = 0 : i64, tpu.core_type = #tpu.core_type<tc>, window_params = [{transform_indices = @transform_0, window_bounds = array<i64: 2, 1024>}, {transform_indices = @transform_1, window_bounds = array<i64: 2, 1024>}]} {
    %c0 = arith.constant 0 : index
    %c0_0 = arith.constant 0 : index
    %0 = vector.load %arg1[%c0, %c0_0] : memref<2x1024xf32, #tpu.memory_space<vmem>>, vector<2x1024xf32>
    %c0_1 = arith.constant 0 : index
    %c0_2 = arith.constant 0 : index
    %1 = vector.load %arg2[%c0_1, %c0_2] : memref<2x1024xf32, #tpu.memory_space<vmem>>, vector<2x1024xf32>
    tpu.vector_store %arg2[%c0_1, %c0_2], %0 {strides = array<i32>} : memref<2x1024xf32, #tpu.memory_space<vmem>>, vector<2x1024xf32>,
    return
  }
  func.func @transform_0(%arg0: i32) -> (i32, i32) {
    %c0_i32 = arith.constant 0 : i32
    %c0_i32_0 = arith.constant 0 : i32
    return %arg0, %c0_i32 : i32, i32
  }
  func.func @transform_1(%arg0: i32) -> (i32, i32) {
    %c0_i32 = arith.constant 0 : i32
    %c0_i32_0 = arith.constant 0 : i32
    return %arg0, %c0_i32 : i32, i32
  }
}

</mosaic_0001>

<bundles_post_ra>
// kernel: tpu_custom_call.1
= control target key start
LH: loop header
LB: loop body
LE: loop exit
PB: predicated region body
PF: predicated region fallthrough
CT: control target
= control target key end

     0   :  { %6 = vsyncpa [#allocation3], 0  ;;  %s116_s0 = inlined_call_operand.hbm [shape: f32[2,1024], index: 0, kind: input, shape index: {}, may-alias: {0,1}]   ;;  %s117_s1 = inlined_call_operand.hbm [shape: f32[2,1024], index: 1, kind: output, shape index: {}, may-alias: {0,1}]  }
   0x1   :  { %7 = vsyncpa [#allocation4], 0  ;;  %s13_s8 = sshll.u32 %s116_s0, 4  ;;  %s98_s9 = smov [#allocation2]   ;;  %s14_s8 = int_to_ptr.hbm [resolvable:$true] %s13_s8 }
   0x2   :  { %s15_s10 = sshll.u32 %s98_s9, 4  ;;  %s16_s10 = int_to_ptr.vmem [resolvable:$true] %s15_s10 }
   0x3   :  { %18 = dma.hbm_to_vmem [thread:$0]  %s14_s8, 256, %s16_s10, [#allocation3]  }
   0x4   :  { %94 = dma.done.wait [#allocation3], 256  }
   0x5   :  { %95 = vsyncadd [#allocation3], 4294967040  ;;  %s99_s11 = smov [#allocation5]   ;;  %s34_s15 = sshll.u32 %s117_s1, 4  ;;  %v23_v0 = vld [vmem:[#allocation2] sm:$0xff]  ;;  %v24_v1 = vld [vmem:[#allocation2 + $0x8] sm:$0xff]  ;;  %s35_s15 = int_to_ptr.hbm [resolvable:$true] %s34_s15 }
   0x6   :  { %s32_s12 = sshll.u32 %s99_s11, 4  ;;  %25 = vst [vmem:[#allocation5] sm:$0xff] %v23_v0  ;;  %s33_s12 = int_to_ptr.vmem [resolvable:$true] %s32_s12 }
   0x7   :  { %26 = vst [vmem:[#allocation5 + $0x8] sm:$0xff] %v24_v1 }
   0x8   :  { %37 = dma.vmem_to_hbm [thread:$0]  %s33_s12, 256, %s35_s15, [#allocation4]  }
   0x9   :  { %96 = dma.done.wait [#allocation4], 256  }
   0xa   :  { %97 = vsyncadd [#allocation4], 4294967040 }
   0xb   :  { %42 = vsyncpa [#allocation3], 1 }
   0xc   :  { %43 = vsyncpa [#allocation4], 1 }

</bundles_post_ra>
